<compile_context>
chip_gen: v7x
topology: tpu7x:2x2x1
jax: 0.10.0
libtpu: 0.0.40
codegen_flags: <defaults>
</compile_context>

<pallas_src>
import functools

import jax
import jax.numpy as jnp
from jax.experimental import pallas as pl
from jax.experimental.pallas import tpu as pltpu


HEADS = 2
SEQ_LEN = 8
MOD_DIM = 32
FF_DIM = 64
BATCH = 2
LN_EPS = 1e-4  # PyTorch LN default in the reference module


def transformer_kernel(x_ref, g1_ref, be1_ref, wqkv_ref, wu_ref, bu_ref,
                       g2_ref, be2_ref, w1_ref, c1_ref, w2_ref, c2_ref,
                       o_ref, ctx_ref,
                       *, batch, seq_len, heads, head_dim, eps):
    """Single-step fused Transformer block.

    x_ref    : (B*S, D)  tokens, batch folded into the sublane axis
    g*/be*   : (1, D)    LayerNorm gamma / beta
    wqkv_ref : (D, 3D)   fused Q|K|V projection weights (in_dim, out_dim)
    wu_ref   : (D, D), bu_ref: (1, D)   attention output projection
    w1_ref   : (D, F), c1_ref: (1, F)   FF up-projection
    w2_ref   : (F, D), c2_ref: (1, D)   FF down-projection
    o_ref    : (B*S, D)  output
    ctx_ref  : (B*S, D)  fp32 VMEM scratch for attention context
    """
    d = heads * head_dim
    x = x_ref[...].astype(jnp.float32)                       # (B*S, D)

    def layer_norm(v, gamma, beta):
        mean = jnp.mean(v, axis=-1, keepdims=True)
        var = jnp.mean((v - mean) ** 2, axis=-1, keepdims=True)
        y = (v - mean) * jax.lax.rsqrt(var + eps)
        return y * gamma + beta

    # ---- sublayer 1: LN -> MHSA -> residual -------------------------------
    h1 = layer_norm(x, g1_ref[...], be1_ref[...])             # (B*S, D)

    # One fused QKV projection: (B*S, D) @ (D, 3D) -> (B*S, 3D).
    qkv = jnp.dot(h1, wqkv_ref[...], preferred_element_type=jnp.float32)

    scale = 1.0 / jnp.sqrt(jnp.float32(head_dim))

    # Attention is per batch element (scores are (S, S) within a batch).
    # Static unrolled loops over batch and heads; results written into the
    # ctx scratch at static offsets (no concatenate).
    for b in range(batch):                                    # static unroll
        r0 = b * seq_len
        for h in range(heads):                                # static unroll
            c0 = h * head_dim
            qh = qkv[r0:r0 + seq_len, c0:c0 + head_dim]               # (S, hd)
            kh = qkv[r0:r0 + seq_len, d + c0:d + c0 + head_dim]       # (S, hd)
            vh = qkv[r0:r0 + seq_len, 2 * d + c0:2 * d + c0 + head_dim]

            s = jnp.dot(qh, kh.T, preferred_element_type=jnp.float32) * scale
            s = s - jnp.max(s, axis=-1, keepdims=True)        # stable softmax
            p = jnp.exp(s)
            p = p * pl.reciprocal(jnp.sum(p, axis=-1, keepdims=True),
                                  approx=True)
            ctx_ref[r0:r0 + seq_len, c0:c0 + head_dim] = jnp.dot(
                p, vh, preferred_element_type=jnp.float32)

    ctx = ctx_ref[...]                                        # (B*S, D)
    attn = jnp.dot(ctx, wu_ref[...],
                   preferred_element_type=jnp.float32) + bu_ref[...]
    x1 = x + attn                                             # residual 1

    # ---- sublayer 2: LN -> FF (Linear-ReLU-Linear) -> residual ------------
    h2 = layer_norm(x1, g2_ref[...], be2_ref[...])
    f = jnp.dot(h2, w1_ref[...],
                preferred_element_type=jnp.float32) + c1_ref[...]
    f = jnp.maximum(f, jnp.float32(0.0))
    f = jnp.dot(f, w2_ref[...],
                preferred_element_type=jnp.float32) + c2_ref[...]

    o_ref[...] = (x1 + f).astype(o_ref.dtype)


def transformer_pallas(x, params, *, heads, eps=LN_EPS):
    batch, seq_len, mod_dim = x.shape
    ff_dim = params["w1"].shape[1]
    head_dim = mod_dim // heads

    # Fold batch into the sublane axis (single grid step) and fuse QKV weights.
    x2d = x.reshape(batch * seq_len, mod_dim)
    wqkv = jnp.concatenate([params["wq"], params["wk"], params["wv"]], axis=1)

    def row(v):  # present 1-D params as (1, n) 2-D VMEM tiles
        return v.reshape(1, -1)

    kernel = functools.partial(transformer_kernel, batch=batch,
                               seq_len=seq_len, heads=heads,
                               head_dim=head_dim, eps=eps)

    full = lambda i: (0, 0)  # every BlockSpec covers the full (small) array

    out2d = pl.pallas_call(
        kernel,
        out_shape=jax.ShapeDtypeStruct((batch * seq_len, mod_dim), x.dtype),
        grid=(1,),
        in_specs=[
            pl.BlockSpec((batch * seq_len, mod_dim), full),   # x (B*S, D)
            pl.BlockSpec((1, mod_dim), full),                 # LN1 gamma
            pl.BlockSpec((1, mod_dim), full),                 # LN1 beta
            pl.BlockSpec((mod_dim, 3 * mod_dim), full),       # fused Wqkv
            pl.BlockSpec((mod_dim, mod_dim), full),           # Wu
            pl.BlockSpec((1, mod_dim), full),                 # bu
            pl.BlockSpec((1, mod_dim), full),                 # LN2 gamma
            pl.BlockSpec((1, mod_dim), full),                 # LN2 beta
            pl.BlockSpec((mod_dim, ff_dim), full),            # W1
            pl.BlockSpec((1, ff_dim), full),                  # b1
            pl.BlockSpec((ff_dim, mod_dim), full),            # W2
            pl.BlockSpec((1, mod_dim), full),                 # b2
        ],
        out_specs=pl.BlockSpec((batch * seq_len, mod_dim), full),
        scratch_shapes=[pltpu.VMEM((batch * seq_len, mod_dim), jnp.float32)],
        compiler_params=pltpu.CompilerParams(
            dimension_semantics=("arbitrary",)),
    )(x2d,
      row(params["g1"]), row(params["be1"]),
      wqkv, params["wu"], row(params["bu"]),
      row(params["g2"]), row(params["be2"]),
      params["w1"], row(params["c1"]),
      params["w2"], row(params["c2"]))

    return out2d.reshape(batch, seq_len, mod_dim)


def transformer_reference(x, params, *, heads, eps=LN_EPS):
    """Pure-JAX reference mirroring the PyTorch Transformer.forward."""
    batch, seq_len, mod_dim = x.shape
    head_dim = mod_dim // heads

    def ln(v, gamma, beta):
        mean = jnp.mean(v, -1, keepdims=True)
        var = jnp.mean((v - mean) ** 2, -1, keepdims=True)
        y = (v - mean) / jnp.sqrt(var + eps)
        return y * gamma + beta

    def mhsa(v):
        q = v @ params["wq"]
        k = v @ params["wk"]
        val = v @ params["wv"]

        def split(t):
            return t.reshape(batch, seq_len, heads, head_dim).transpose(0, 2, 1, 3)

        q, k, val = split(q), split(k), split(val)
        scores = jnp.einsum("bhqd,bhkd->bhqk", q, k) / jnp.sqrt(
            jnp.float32(head_dim))
        p = jax.nn.softmax(scores, axis=-1)
        ctx = jnp.einsum("bhqk,bhkd->bhqd", p, val)
        ctx = ctx.transpose(0, 2, 1, 3).reshape(batch, seq_len, mod_dim)
        return ctx @ params["wu"] + params["bu"]

    attn = mhsa(ln(x, params["g1"], params["be1"]))
    x1 = attn + x
    h2 = ln(x1, params["g2"], params["be2"])
    ff = jnp.maximum(h2 @ params["w1"] + params["c1"], 0.0) @ params["w2"] \
        + params["c2"]
    return ff + x1


if __name__ == "__main__":
    key = jax.random.PRNGKey(0)
    ks = jax.random.split(key, 10)

    x = jax.random.normal(ks[0], (BATCH, SEQ_LEN, MOD_DIM), dtype=jnp.float32)

    s_d = 1.0 / jnp.sqrt(jnp.float32(MOD_DIM))
    s_f = 1.0 / jnp.sqrt(jnp.float32(FF_DIM))
    params = {
        # MHSA linears (stored as (in_dim, out_dim); y = x @ W)
        "wq": jax.random.uniform(ks[1], (MOD_DIM, MOD_DIM), jnp.float32, -s_d, s_d),
        "wk": jax.random.uniform(ks[2], (MOD_DIM, MOD_DIM), jnp.float32, -s_d, s_d),
        "wv": jax.random.uniform(ks[3], (MOD_DIM, MOD_DIM), jnp.float32, -s_d, s_d),
        "wu": jax.random.uniform(ks[4], (MOD_DIM, MOD_DIM), jnp.float32, -s_d, s_d),
        "bu": jax.random.uniform(ks[5], (MOD_DIM,), jnp.float32, -s_d, s_d),
        # Feed-forward
        "w1": jax.random.uniform(ks[6], (MOD_DIM, FF_DIM), jnp.float32, -s_d, s_d),
        "c1": jax.random.uniform(ks[7], (FF_DIM,), jnp.float32, -s_d, s_d),
        "w2": jax.random.uniform(ks[8], (FF_DIM, MOD_DIM), jnp.float32, -s_f, s_f),
        "c2": jax.random.uniform(ks[9], (MOD_DIM,), jnp.float32, -s_f, s_f),
        # LN buffers exactly as in the PyTorch module: gamma=zeros, beta=ones.
        "g1": jnp.zeros((MOD_DIM,), jnp.float32),
        "be1": jnp.ones((MOD_DIM,), jnp.float32),
        "g2": jnp.zeros((MOD_DIM,), jnp.float32),
        "be2": jnp.ones((MOD_DIM,), jnp.float32),
    }

    out = transformer_pallas(x, params, heads=HEADS)
    out = jax.block_until_ready(out)

    ref = transformer_reference(x, params, heads=HEADS)
    assert out.shape == (BATCH, SEQ_LEN, MOD_DIM)
    # Slightly looser tolerance than pure-f32 because the softmax normalization
    # uses the EUP approximate reciprocal (per perf review).
    assert jnp.allclose(out, ref, atol=2e-3, rtol=2e-3), "mismatch vs reference"

    print("KERNEL_OK")
</pallas_src>

<mosaic_0001>
module attributes {stable_mosaic.version = 11 : i64} {
  func.func @transformer_kernel(%arg0: i32, %arg1: memref<16x32xf32, #tpu.memory_space<vmem>>, %arg2: memref<1x32xf32, #tpu.memory_space<vmem>>, %arg3: memref<1x32xf32, #tpu.memory_space<vmem>>, %arg4: memref<32x96xf32, #tpu.memory_space<vmem>>, %arg5: memref<32x32xf32, #tpu.memory_space<vmem>>, %arg6: memref<1x32xf32, #tpu.memory_space<vmem>>, %arg7: memref<1x32xf32, #tpu.memory_space<vmem>>, %arg8: memref<1x32xf32, #tpu.memory_space<vmem>>, %arg9: memref<32x64xf32, #tpu.memory_space<vmem>>, %arg10: memref<1x64xf32, #tpu.memory_space<vmem>>, %arg11: memref<64x32xf32, #tpu.memory_space<vmem>>, %arg12: memref<1x32xf32, #tpu.memory_space<vmem>>, %arg13: memref<16x32xf32, #tpu.memory_space<vmem>>, %arg14: memref<16x32xf32, #tpu.memory_space<vmem>>) attributes {dimension_semantics = [#tpu.dimension_semantics<arbitrary>], iteration_bounds = array<i64: 1>, scalar_prefetch = 0 : i64, scratch_operands = 1 : i64, tpu.core_type = #tpu.core_type<tc>, window_params = [{pipeline_mode = #tpu.pipeline_mode<synchronous>, transform_indices = @transform_0, window_bounds = array<i64: 16, 32>}, {pipeline_mode = #tpu.pipeline_mode<synchronous>, transform_indices = @transform_1, window_bounds = array<i64: 1, 32>}, {pipeline_mode = #tpu.pipeline_mode<synchronous>, transform_indices = @transform_2, window_bounds = array<i64: 1, 32>}, {pipeline_mode = #tpu.pipeline_mode<synchronous>, transform_indices = @transform_3, window_bounds = array<i64: 32, 96>}, {pipeline_mode = #tpu.pipeline_mode<synchronous>, transform_indices = @transform_4, window_bounds = array<i64: 32, 32>}, {pipeline_mode = #tpu.pipeline_mode<synchronous>, transform_indices = @transform_5, window_bounds = array<i64: 1, 32>}, {pipeline_mode = #tpu.pipeline_mode<synchronous>, transform_indices = @transform_6, window_bounds = array<i64: 1, 32>}, {pipeline_mode = #tpu.pipeline_mode<synchronous>, transform_indices = @transform_7, window_bounds = array<i64: 1, 32>}, {pipeline_mode = #tpu.pipeline_mode<synchronous>, transform_indices = @transform_8, window_bounds = array<i64: 32, 64>}, {pipeline_mode = #tpu.pipeline_mode<synchronous>, transform_indices = @transform_9, window_bounds = array<i64: 1, 64>}, {pipeline_mode = #tpu.pipeline_mode<synchronous>, transform_indices = @transform_10, window_bounds = array<i64: 64, 32>}, {pipeline_mode = #tpu.pipeline_mode<synchronous>, transform_indices = @transform_11, window_bounds = array<i64: 1, 32>}, {pipeline_mode = #tpu.pipeline_mode<synchronous>, transform_indices = @transform_12, window_bounds = array<i64: 16, 32>}]} {
    %c0 = arith.constant 0 : index
    %c0_0 = arith.constant 0 : index
    %0 = vector.load %arg1[%c0, %c0_0] : memref<16x32xf32, #tpu.memory_space<vmem>>, vector<16x32xf32>
    %c0_1 = arith.constant 0 : index
    %c0_2 = arith.constant 0 : index
    %1 = vector.load %arg2[%c0_1, %c0_2] : memref<1x32xf32, #tpu.memory_space<vmem>>, vector<1x32xf32>
    %c0_3 = arith.constant 0 : index
    %c0_4 = arith.constant 0 : index
    %2 = vector.load %arg3[%c0_3, %c0_4] : memref<1x32xf32, #tpu.memory_space<vmem>>, vector<1x32xf32>
    %cst = arith.constant dense<0.000000e+00> : vector<16xf32>
    %3 = vector.multi_reduction <add>, %0, %cst [1] : vector<16x32xf32> to vector<16xf32>
    %4 = vector.shape_cast %3 : vector<16xf32> to vector<16x1xf32>
    %cst_5 = arith.constant 3.200000e+01 : f32
    %5 = vector.broadcast %cst_5 : f32 to vector<16x1xf32>
    %6 = arith.divf %4, %5 : vector<16x1xf32>
    %7 = vector.broadcast %6 : vector<16x1xf32> to vector<16x32xf32>
    %8 = arith.subf %0, %7 : vector<16x32xf32>
    %9 = arith.mulf %8, %8 : vector<16x32xf32>
    %cst_6 = arith.constant dense<0.000000e+00> : vector<16xf32>
    %10 = vector.multi_reduction <add>, %9, %cst_6 [1] : vector<16x32xf32> to vector<16xf32>
    %11 = vector.shape_cast %10 : vector<16xf32> to vector<16x1xf32>
    %cst_7 = arith.constant 3.200000e+01 : f32
    %12 = vector.broadcast %cst_7 : f32 to vector<16x1xf32>
    %13 = arith.divf %11, %12 : vector<16x1xf32>
    %14 = vector.broadcast %6 : vector<16x1xf32> to vector<16x32xf32>
    %15 = arith.subf %0, %14 : vector<16x32xf32>
    %cst_8 = arith.constant 9.99999974E-5 : f32
    %16 = vector.broadcast %cst_8 : f32 to vector<16x1xf32>
    %17 = arith.addf %13, %16 : vector<16x1xf32>
    %18 = math.rsqrt %17 : vector<16x1xf32>
    %19 = vector.broadcast %18 : vector<16x1xf32> to vector<16x32xf32>
    %20 = arith.mulf %15, %19 : vector<16x32xf32>
    %21 = vector.broadcast %1 : vector<1x32xf32> to vector<16x32xf32>
    %22 = arith.mulf %20, %21 : vector<16x32xf32>
    %23 = vector.broadcast %2 : vector<1x32xf32> to vector<16x32xf32>
    %24 = arith.addf %22, %23 : vector<16x32xf32>
    %c0_9 = arith.constant 0 : index
    %c0_10 = arith.constant 0 : index
    %25 = vector.load %arg4[%c0_9, %c0_10] : memref<32x96xf32, #tpu.memory_space<vmem>>, vector<32x96xf32>
    %cst_11 = arith.constant dense<0.000000e+00> : vector<16x96xf32>
    %26 = tpu.matmul %24, %25, %cst_11 {dimension_numbers = #tpu.dot_dimension_numbers<[1], [0], [0], [1], [0, 0, 1, 1], [], []>} : vector<16x32xf32>, vector<32x96xf32>, vector<16x96xf32> -> vector<16x96xf32>
    %cst_12 = arith.constant 1.600000e+01 : f32
    %27 = math.sqrt %cst_12 : f32
    %cst_13 = arith.constant 1.000000e+00 : f32
    %28 = arith.divf %cst_13, %27 : f32
    %29 = vector.extract_strided_slice %26 {offsets = [0, 0], sizes = [8, 16], strides = [1, 1]} : vector<16x96xf32> to vector<8x16xf32>
    %30 = vector.extract_strided_slice %26 {offsets = [0, 32], sizes = [8, 16], strides = [1, 1]} : vector<16x96xf32> to vector<8x16xf32>
    %31 = vector.extract_strided_slice %26 {offsets = [0, 64], sizes = [8, 16], strides = [1, 1]} : vector<16x96xf32> to vector<8x16xf32>
    %32 = tpu.transpose %30, [1, 0] : vector<8x16xf32> -> vector<16x8xf32>
    %cst_14 = arith.constant dense<0.000000e+00> : vector<8x8xf32>
    %33 = tpu.matmul %29, %32, %cst_14 {dimension_numbers = #tpu.dot_dimension_numbers<[1], [0], [0], [1], [0, 0, 1, 1], [], []>} : vector<8x16xf32>, vector<16x8xf32>, vector<8x8xf32> -> vector<8x8xf32>
    %34 = vector.broadcast %28 : f32 to vector<8x8xf32>
    %35 = arith.mulf %33, %34 : vector<8x8xf32>
    %cst_15 = arith.constant dense<0xFF800000> : vector<8xf32>
    %36 = vector.multi_reduction <maximumf>, %35, %cst_15 [1] : vector<8x8xf32> to vector<8xf32>
    %37 = vector.shape_cast %36 : vector<8xf32> to vector<8x1xf32>
    %38 = vector.broadcast %37 : vector<8x1xf32> to vector<8x8xf32>
    %39 = arith.subf %35, %38 : vector<8x8xf32>
    %40 = math.exp %39 : vector<8x8xf32>
    %cst_16 = arith.constant dense<0.000000e+00> : vector<8xf32>
    %41 = vector.multi_reduction <add>, %40, %cst_16 [1] : vector<8x8xf32> to vector<8xf32>
    %42 = vector.shape_cast %41 : vector<8xf32> to vector<8x1xf32>
    %43 = tpu.reciprocal %42 {approx = true} : vector<8x1xf32> -> vector<8x1xf32>
    %44 = vector.broadcast %43 : vector<8x1xf32> to vector<8x8xf32>
    %45 = arith.mulf %40, %44 : vector<8x8xf32>
    %cst_17 = arith.constant dense<0.000000e+00> : vector<8x16xf32>
    %46 = tpu.matmul %45, %31, %cst_17 {dimension_numbers = #tpu.dot_dimension_numbers<[1], [0], [0], [1], [0, 0, 1, 1], [], []>} : vector<8x8xf32>, vector<8x16xf32>, vector<8x16xf32> -> vector<8x16xf32>
    %c0_18 = arith.constant 0 : index
    %c0_19 = arith.constant 0 : index
    %47 = vector.load %arg14[%c0_18, %c0_19] : memref<16x32xf32, #tpu.memory_space<vmem>>, vector<8x16xf32>
    tpu.vector_store %arg14[%c0_18, %c0_19], %46 {strides = array<i32>} : memref<16x32xf32, #tpu.memory_space<vmem>>, vector<8x16xf32>,
    %48 = vector.extract_strided_slice %26 {offsets = [0, 16], sizes = [8, 16], strides = [1, 1]} : vector<16x96xf32> to vector<8x16xf32>
    %49 = vector.extract_strided_slice %26 {offsets = [0, 48], sizes = [8, 16], strides = [1, 1]} : vector<16x96xf32> to vector<8x16xf32>
    %50 = vector.extract_strided_slice %26 {offsets = [0, 80], sizes = [8, 16], strides = [1, 1]} : vector<16x96xf32> to vector<8x16xf32>
    %51 = tpu.transpose %49, [1, 0] : vector<8x16xf32> -> vector<16x8xf32>
    %cst_20 = arith.constant dense<0.000000e+00> : vector<8x8xf32>
    %52 = tpu.matmul %48, %51, %cst_20 {dimension_numbers = #tpu.dot_dimension_numbers<[1], [0], [0], [1], [0, 0, 1, 1], [], []>} : vector<8x16xf32>, vector<16x8xf32>, vector<8x8xf32> -> vector<8x8xf32>
    %53 = vector.broadcast %28 : f32 to vector<8x8xf32>
    %54 = arith.mulf %52, %53 : vector<8x8xf32>
    %cst_21 = arith.constant dense<0xFF800000> : vector<8xf32>
    %55 = vector.multi_reduction <maximumf>, %54, %cst_21 [1] : vector<8x8xf32> to vector<8xf32>
    %56 = vector.shape_cast %55 : vector<8xf32> to vector<8x1xf32>
    %57 = vector.broadcast %56 : vector<8x1xf32> to vector<8x8xf32>
    %58 = arith.subf %54, %57 : vector<8x8xf32>
    %59 = math.exp %58 : vector<8x8xf32>
    %cst_22 = arith.constant dense<0.000000e+00> : vector<8xf32>
    %60 = vector.multi_reduction <add>, %59, %cst_22 [1] : vector<8x8xf32> to vector<8xf32>
    %61 = vector.shape_cast %60 : vector<8xf32> to vector<8x1xf32>
    %62 = tpu.reciprocal %61 {approx = true} : vector<8x1xf32> -> vector<8x1xf32>
    %63 = vector.broadcast %62 : vector<8x1xf32> to vector<8x8xf32>
    %64 = arith.mulf %59, %63 : vector<8x8xf32>
    %cst_23 = arith.constant dense<0.000000e+00> : vector<8x16xf32>
    %65 = tpu.matmul %64, %50, %cst_23 {dimension_numbers = #tpu.dot_dimension_numbers<[1], [0], [0], [1], [0, 0, 1, 1], [], []>} : vector<8x8xf32>, vector<8x16xf32>, vector<8x16xf32> -> vector<8x16xf32>
    %c0_24 = arith.constant 0 : index
    %c16 = arith.constant 16 : index
    %66 = vector.load %arg14[%c0_24, %c16] : memref<16x32xf32, #tpu.memory_space<vmem>>, vector<8x16xf32>
    tpu.vector_store %arg14[%c0_24, %c16], %65 {strides = array<i32>} : memref<16x32xf32, #tpu.memory_space<vmem>>, vector<8x16xf32>,
    %67 = vector.extract_strided_slice %26 {offsets = [8, 0], sizes = [8, 16], strides = [1, 1]} : vector<16x96xf32> to vector<8x16xf32>
    %68 = vector.extract_strided_slice %26 {offsets = [8, 32], sizes = [8, 16], strides = [1, 1]} : vector<16x96xf32> to vector<8x16xf32>
    %69 = vector.extract_strided_slice %26 {offsets = [8, 64], sizes = [8, 16], strides = [1, 1]} : vector<16x96xf32> to vector<8x16xf32>
    %70 = tpu.transpose %68, [1, 0] : vector<8x16xf32> -> vector<16x8xf32>
    %cst_25 = arith.constant dense<0.000000e+00> : vector<8x8xf32>
    %71 = tpu.matmul %67, %70, %cst_25 {dimension_numbers = #tpu.dot_dimension_numbers<[1], [0], [0], [1], [0, 0, 1, 1], [], []>} : vector<8x16xf32>, vector<16x8xf32>, vector<8x8xf32> -> vector<8x8xf32>
    %72 = vector.broadcast %28 : f32 to vector<8x8xf32>
    %73 = arith.mulf %71, %72 : vector<8x8xf32>
    %cst_26 = arith.constant dense<0xFF800000> : vector<8xf32>
    %74 = vector.multi_reduction <maximumf>, %73, %cst_26 [1] : vector<8x8xf32> to vector<8xf32>
    %75 = vector.shape_cast %74 : vector<8xf32> to vector<8x1xf32>
    %76 = vector.broadcast %75 : vector<8x1xf32> to vector<8x8xf32>
    %77 = arith.subf %73, %76 : vector<8x8xf32>
    %78 = math.exp %77 : vector<8x8xf32>
    %cst_27 = arith.constant dense<0.000000e+00> : vector<8xf32>
    %79 = vector.multi_reduction <add>, %78, %cst_27 [1] : vector<8x8xf32> to vector<8xf32>
    %80 = vector.shape_cast %79 : vector<8xf32> to vector<8x1xf32>
    %81 = tpu.reciprocal %80 {approx = true} : vector<8x1xf32> -> vector<8x1xf32>
    %82 = vector.broadcast %81 : vector<8x1xf32> to vector<8x8xf32>
    %83 = arith.mulf %78, %82 : vector<8x8xf32>
    %cst_28 = arith.constant dense<0.000000e+00> : vector<8x16xf32>
    %84 = tpu.matmul %83, %69, %cst_28 {dimension_numbers = #tpu.dot_dimension_numbers<[1], [0], [0], [1], [0, 0, 1, 1], [], []>} : vector<8x8xf32>, vector<8x16xf32>, vector<8x16xf32> -> vector<8x16xf32>
    %c8 = arith.constant 8 : index
    %c0_29 = arith.constant 0 : index
    %85 = vector.load %arg14[%c8, %c0_29] : memref<16x32xf32, #tpu.memory_space<vmem>>, vector<8x16xf32>
    tpu.vector_store %arg14[%c8, %c0_29], %84 {strides = array<i32>} : memref<16x32xf32, #tpu.memory_space<vmem>>, vector<8x16xf32>,
    %86 = vector.extract_strided_slice %26 {offsets = [8, 16], sizes = [8, 16], strides = [1, 1]} : vector<16x96xf32> to vector<8x16xf32>
    %87 = vector.extract_strided_slice %26 {offsets = [8, 48], sizes = [8, 16], strides = [1, 1]} : vector<16x96xf32> to vector<8x16xf32>
    %88 = vector.extract_strided_slice %26 {offsets = [8, 80], sizes = [8, 16], strides = [1, 1]} : vector<16x96xf32> to vector<8x16xf32>
    %89 = tpu.transpose %87, [1, 0] : vector<8x16xf32> -> vector<16x8xf32>
    %cst_30 = arith.constant dense<0.000000e+00> : vector<8x8xf32>
    %90 = tpu.matmul %86, %89, %cst_30 {dimension_numbers = #tpu.dot_dimension_numbers<[1], [0], [0], [1], [0, 0, 1, 1], [], []>} : vector<8x16xf32>, vector<16x8xf32>, vector<8x8xf32> -> vector<8x8xf32>
    %91 = vector.broadcast %28 : f32 to vector<8x8xf32>
    %92 = arith.mulf %90, %91 : vector<8x8xf32>
    %cst_31 = arith.constant dense<0xFF800000> : vector<8xf32>
    %93 = vector.multi_reduction <maximumf>, %92, %cst_31 [1] : vector<8x8xf32> to vector<8xf32>
    %94 = vector.shape_cast %93 : vector<8xf32> to vector<8x1xf32>
    %95 = vector.broadcast %94 : vector<8x1xf32> to vector<8x8xf32>
    %96 = arith.subf %92, %95 : vector<8x8xf32>
    %97 = math.exp %96 : vector<8x8xf32>
    %cst_32 = arith.constant dense<0.000000e+00> : vector<8xf32>
    %98 = vector.multi_reduction <add>, %97, %cst_32 [1] : vector<8x8xf32> to vector<8xf32>
    %99 = vector.shape_cast %98 : vector<8xf32> to vector<8x1xf32>
    %100 = tpu.reciprocal %99 {approx = true} : vector<8x1xf32> -> vector<8x1xf32>
    %101 = vector.broadcast %100 : vector<8x1xf32> to vector<8x8xf32>
    %102 = arith.mulf %97, %101 : vector<8x8xf32>
    %cst_33 = arith.constant dense<0.000000e+00> : vector<8x16xf32>
    %103 = tpu.matmul %102, %88, %cst_33 {dimension_numbers = #tpu.dot_dimension_numbers<[1], [0], [0], [1], [0, 0, 1, 1], [], []>} : vector<8x8xf32>, vector<8x16xf32>, vector<8x16xf32> -> vector<8x16xf32>
    %c8_34 = arith.constant 8 : index
    %c16_35 = arith.constant 16 : index
    %104 = vector.load %arg14[%c8_34, %c16_35] : memref<16x32xf32, #tpu.memory_space<vmem>>, vector<8x16xf32>
    tpu.vector_store %arg14[%c8_34, %c16_35], %103 {strides = array<i32>} : memref<16x32xf32, #tpu.memory_space<vmem>>, vector<8x16xf32>,
    %c0_36 = arith.constant 0 : index
    %c0_37 = arith.constant 0 : index
    %105 = vector.load %arg14[%c0_36, %c0_37] : memref<16x32xf32, #tpu.memory_space<vmem>>, vector<16x32xf32>
    %c0_38 = arith.constant 0 : index
    %c0_39 = arith.constant 0 : index
    %106 = vector.load %arg5[%c0_38, %c0_39] : memref<32x32xf32, #tpu.memory_space<vmem>>, vector<32x32xf32>
    %cst_40 = arith.constant dense<0.000000e+00> : vector<16x32xf32>
    %107 = tpu.matmul %105, %106, %cst_40 {dimension_numbers = #tpu.dot_dimension_numbers<[1], [0], [0], [1], [0, 0, 1, 1], [], []>} : vector<16x32xf32>, vector<32x32xf32>, vector<16x32xf32> -> vector<16x32xf32>
    %c0_41 = arith.constant 0 : index
    %c0_42 = arith.constant 0 : index
    %108 = vector.load %arg6[%c0_41, %c0_42] : memref<1x32xf32, #tpu.memory_space<vmem>>, vector<1x32xf32>
    %109 = vector.broadcast %108 : vector<1x32xf32> to vector<16x32xf32>
    %110 = arith.addf %107, %109 : vector<16x32xf32>
    %111 = arith.addf %0, %110 : vector<16x32xf32>
    %c0_43 = arith.constant 0 : index
    %c0_44 = arith.constant 0 : index
    %112 = vector.load %arg7[%c0_43, %c0_44] : memref<1x32xf32, #tpu.memory_space<vmem>>, vector<1x32xf32>
    %c0_45 = arith.constant 0 : index
    %c0_46 = arith.constant 0 : index
    %113 = vector.load %arg8[%c0_45, %c0_46] : memref<1x32xf32, #tpu.memory_space<vmem>>, vector<1x32xf32>
    %cst_47 = arith.constant dense<0.000000e+00> : vector<16xf32>
    %114 = vector.multi_reduction <add>, %111, %cst_47 [1] : vector<16x32xf32> to vector<16xf32>
    %115 = vector.shape_cast %114 : vector<16xf32> to vector<16x1xf32>
    %cst_48 = arith.constant 3.200000e+01 : f32
    %116 = vector.broadcast %cst_48 : f32 to vector<16x1xf32>
    %117 = arith.divf %115, %116 : vector<16x1xf32>
    %118 = vector.broadcast %117 : vector<16x1xf32> to vector<16x32xf32>
    %119 = arith.subf %111, %118 : vector<16x32xf32>
    %120 = arith.mulf %119, %119 : vector<16x32xf32>
    %cst_49 = arith.constant dense<0.000000e+00> : vector<16xf32>
    %121 = vector.multi_reduction <add>, %120, %cst_49 [1] : vector<16x32xf32> to vector<16xf32>
    %122 = vector.shape_cast %121 : vector<16xf32> to vector<16x1xf32>
    %cst_50 = arith.constant 3.200000e+01 : f32
    %123 = vector.broadcast %cst_50 : f32 to vector<16x1xf32>
    %124 = arith.divf %122, %123 : vector<16x1xf32>
    %125 = vector.broadcast %117 : vector<16x1xf32> to vector<16x32xf32>
    %126 = arith.subf %111, %125 : vector<16x32xf32>
    %cst_51 = arith.constant 9.99999974E-5 : f32
    %127 = vector.broadcast %cst_51 : f32 to vector<16x1xf32>
    %128 = arith.addf %124, %127 : vector<16x1xf32>
    %129 = math.rsqrt %128 : vector<16x1xf32>
    %130 = vector.broadcast %129 : vector<16x1xf32> to vector<16x32xf32>
    %131 = arith.mulf %126, %130 : vector<16x32xf32>
    %132 = vector.broadcast %112 : vector<1x32xf32> to vector<16x32xf32>
    %133 = arith.mulf %131, %132 : vector<16x32xf32>
    %134 = vector.broadcast %113 : vector<1x32xf32> to vector<16x32xf32>
    %135 = arith.addf %133, %134 : vector<16x32xf32>
    %c0_52 = arith.constant 0 : index
    %c0_53 = arith.constant 0 : index
    %136 = vector.load %arg9[%c0_52, %c0_53] : memref<32x64xf32, #tpu.memory_space<vmem>>, vector<32x64xf32>
    %cst_54 = arith.constant dense<0.000000e+00> : vector<16x64xf32>
    %137 = tpu.matmul %135, %136, %cst_54 {dimension_numbers = #tpu.dot_dimension_numbers<[1], [0], [0], [1], [0, 0, 1, 1], [], []>} : vector<16x32xf32>, vector<32x64xf32>, vector<16x64xf32> -> vector<16x64xf32>
    %c0_55 = arith.constant 0 : index
    %c0_56 = arith.constant 0 : index
    %138 = vector.load %arg10[%c0_55, %c0_56] : memref<1x64xf32, #tpu.memory_space<vmem>>, vector<1x64xf32>
    %139 = vector.broadcast %138 : vector<1x64xf32> to vector<16x64xf32>
    %140 = arith.addf %137, %139 : vector<16x64xf32>
    %cst_57 = arith.constant 0.000000e+00 : f32
    %141 = vector.broadcast %cst_57 : f32 to vector<16x64xf32>
    %142 = arith.maximumf %140, %141 : vector<16x64xf32>
    %c0_58 = arith.constant 0 : index
    %c0_59 = arith.constant 0 : index
    %143 = vector.load %arg11[%c0_58, %c0_59] : memref<64x32xf32, #tpu.memory_space<vmem>>, vector<64x32xf32>
    %cst_60 = arith.constant dense<0.000000e+00> : vector<16x32xf32>
    %144 = tpu.matmul %142, %143, %cst_60 {dimension_numbers = #tpu.dot_dimension_numbers<[1], [0], [0], [1], [0, 0, 1, 1], [], []>} : vector<16x64xf32>, vector<64x32xf32>, vector<16x32xf32> -> vector<16x32xf32>
    %c0_61 = arith.constant 0 : index
    %c0_62 = arith.constant 0 : index
    %145 = vector.load %arg12[%c0_61, %c0_62] : memref<1x32xf32, #tpu.memory_space<vmem>>, vector<1x32xf32>
    %146 = vector.broadcast %145 : vector<1x32xf32> to vector<16x32xf32>
    %147 = arith.addf %144, %146 : vector<16x32xf32>
    %148 = arith.addf %111, %147 : vector<16x32xf32>
    %c0_63 = arith.constant 0 : index
    %c0_64 = arith.constant 0 : index
    %149 = vector.load %arg13[%c0_63, %c0_64] : memref<16x32xf32, #tpu.memory_space<vmem>>, vector<16x32xf32>
    tpu.vector_store %arg13[%c0_63, %c0_64], %148 {strides = array<i32>} : memref<16x32xf32, #tpu.memory_space<vmem>>, vector<16x32xf32>,
    return
  }
  func.func @transform_0(%arg0: i32) -> (i32, i32) {
    %c0_i32 = arith.constant 0 : i32
    %c0_i32_0 = arith.constant 0 : i32
    %c0_i32_1 = arith.constant 0 : i32
    return %c0_i32, %c0_i32_0 : i32, i32
  }
  func.func @transform_1(%arg0: i32) -> (i32, i32) {
    %c0_i32 = arith.constant 0 : i32
    %c0_i32_0 = arith.constant 0 : i32
    %c0_i32_1 = arith.constant 0 : i32
    return %c0_i32, %c0_i32_0 : i32, i32
  }
  func.func @transform_2(%arg0: i32) -> (i32, i32) {
    %c0_i32 = arith.constant 0 : i32
    %c0_i32_0 = arith.constant 0 : i32
    %c0_i32_1 = arith.constant 0 : i32
    return %c0_i32, %c0_i32_0 : i32, i32
  }
  func.func @transform_3(%arg0: i32) -> (i32, i32) {
    %c0_i32 = arith.constant 0 : i32
    %c0_i32_0 = arith.constant 0 : i32
    %c0_i32_1 = arith.constant 0 : i32
    return %c0_i32, %c0_i32_0 : i32, i32
  }
  func.func @transform_4(%arg0: i32) -> (i32, i32) {
    %c0_i32 = arith.constant 0 : i32
    %c0_i32_0 = arith.constant 0 : i32
    %c0_i32_1 = arith.constant 0 : i32
    return %c0_i32, %c0_i32_0 : i32, i32
  }
  func.func @transform_5(%arg0: i32) -> (i32, i32) {
    %c0_i32 = arith.constant 0 : i32
    %c0_i32_0 = arith.constant 0 : i32
    %c0_i32_1 = arith.constant 0 : i32
    return %c0_i32, %c0_i32_0 : i32, i32
  }
  func.func @transform_6(%arg0: i32) -> (i32, i32) {
    %c0_i32 = arith.constant 0 : i32
    %c0_i32_0 = arith.constant 0 : i32
    %c0_i32_1 = arith.constant 0 : i32
    return %c0_i32, %c0_i32_0 : i32, i32
  }
  func.func @transform_7(%arg0: i32) -> (i32, i32) {
    %c0_i32 = arith.constant 0 : i32
    %c0_i32_0 = arith.constant 0 : i32
    %c0_i32_1 = arith.constant 0 : i32
    return %c0_i32, %c0_i32_0 : i32, i32
  }
  func.func @transform_8(%arg0: i32) -> (i32, i32) {
    %c0_i32 = arith.constant 0 : i32
    %c0_i32_0 = arith.constant 0 : i32
    %c0_i32_1 = arith.constant 0 : i32
    return %c0_i32, %c0_i32_0 : i32, i32
  }
  func.func @transform_9(%arg0: i32) -> (i32, i32) {
    %c0_i32 = arith.constant 0 : i32
    %c0_i32_0 = arith.constant 0 : i32
    %c0_i32_1 = arith.constant 0 : i32
    return %c0_i32, %c0_i32_0 : i32, i32
  }
  func.func @transform_10(%arg0: i32) -> (i32, i32) {
    %c0_i32 = arith.constant 0 : i32
    %c0_i32_0 = arith.constant 0 : i32
    %c0_i32_1 = arith.constant 0 : i32
    return %c0_i32, %c0_i32_0 : i32, i32
  }
  func.func @transform_11(%arg0: i32) -> (i32, i32) {
    %c0_i32 = arith.constant 0 : i32
    %c0_i32_0 = arith.constant 0 : i32
    %c0_i32_1 = arith.constant 0 : i32
    return %c0_i32, %c0_i32_0 : i32, i32
  }
  func.func @transform_12(%arg0: i32) -> (i32, i32) {
    %c0_i32 = arith.constant 0 : i32
    %c0_i32_0 = arith.constant 0 : i32
    %c0_i32_1 = arith.constant 0 : i32
    return %c0_i32, %c0_i32_0 : i32, i32
  }
}

</mosaic_0001>

<bundles_post_ra>
// kernel: tpu_custom_call.1
= control target key start
LH: loop header
LB: loop body
LE: loop exit
PB: predicated region body
PF: predicated region fallthrough
CT: control target
= control target key end

     0   :  { %17 = vsyncpa [#allocation4], 0  ;;  %s1839_s0 = inlined_call_operand.hbm [shape: f32[16,32], index: 0, kind: input, shape index: {}]   ;;  %s1840_s1 = inlined_call_operand.vmem [shape: f32[1,32], index: 1, kind: input, shape index: {}]   ;;  %s1841_s2 = inlined_call_operand.vmem [shape: f32[1,32], index: 2, kind: input, shape index: {}]   ;;  %s1842_s3 = inlined_call_operand.vmem [shape: f32[32,96], index: 3, kind: input, shape index: {}]   ;;  %s1843_s4 = inlined_call_operand.vmem [shape: f32[32,32], index: 4, kind: input, shape index: {}]   ;;  %s1844_s5 = inlined_call_operand.vmem [shape: f32[1,32], index: 5, kind: input, shape index: {}]   ;;  %s1845_s6 = inlined_call_operand.vmem [shape: f32[1,32], index: 6, kind: input, shape index: {}]   ;;  %s1846_s7 = inlined_call_operand.vmem [shape: f32[1,32], index: 7, kind: input, shape index: {}]   ;;  %s1847_s8 = inlined_call_operand.vmem [shape: f32[32,64], index: 8, kind: input, shape index: {}]   ;;  %s1848_s9 = inlined_call_operand.hbm [shape: f32[1,64], index: 9, kind: input, shape index: {}]   ;;  %s1849_s10 = inlined_call_operand.vmem [shape: f32[64,32], index: 10, kind: input, shape index: {}]   ;;  %s1850_s11 = inlined_call_operand.vmem [shape: f32[1,32], index: 11, kind: input, shape index: {}]   ;;  %s1851_s12 = inlined_call_operand.hbm [shape: f32[16,32], index: 12, kind: output, shape index: {}]  }
   0x1   :  { %18 = vsyncpa [#allocation7], 0 }
   0x2   :  { %19 = vsyncpa [#allocation5], 0  ;;  %s1543_s21 = smov [#allocation3]   ;;  %s1471_s25 = scalar_lea.hbm %s1839_s0, 256 }
   0x3   :  { %s25_s22 = sshll.u32 %s1543_s21, 4  ;;  %p1472_p0 = scmp.ne.s32.totalorder %s1839_s0, %s1471_s25  ;;  %s26_s22 = int_to_ptr.vmem [resolvable:$true] %s25_s22 }
   0x4   :  { %p1475_p1 = scmp.lt.u32.totalorder %s1471_s25, %s1839_s0 }
   0x6   :  { %p1477_p2 = pnand %p1475_p1, %p1472_p0 }
   0x8   :  { %1480 = shalt.err (!%p1477_p2)
}
   0x9   :  { %s1481_s30 = scalar_lea.vmem %s26_s22, 256  ;;  %p1486_p4 = scmp.lt.s32.totalorder %s26_s22, %s26_s22 }
   0xa   :  { %p1482_p3 = scmp.ne.s32.totalorder %s26_s22, %s1481_s30  ;;  %p1487_p5 = scmp.lt.s32.totalorder %s1481_s30, %s1481_s30 }
   0xc   :  { %p1488_p6 = por %p1487_p5, %p1486_p4 }
   0xe   :  { %p1489_p7 = pnand %p1488_p6, %p1482_p3 }
  0x10   :  { %1492 = shalt.err (!%p1489_p7)
}
  0x11   :  { %s1544_s13 = smov 128   ;;  %s1545_s14 = smov 8  }
  0x12   :  { %31 = dma.hbm_to_vmem [thread:$0]  %s1839_s0, 256, %s26_s22, [#allocation4], %s1544_s13, %s1544_s13, %s1545_s14  }
  0x13   :  { %s1546_s17 = smov [#allocation6]   ;;  %s1493_s21 = scalar_lea.hbm %s1848_s9, 16 }
  0x14   :  { %s54_s18 = sshll.u32 %s1546_s17, 4  ;;  %p1494_p8 = scmp.ne.s32.totalorder %s1848_s9, %s1493_s21  ;;  %s55_s18 = int_to_ptr.vmem [resolvable:$true] %s54_s18 }
  0x15   :  { %p1497_p9 = scmp.lt.u32.totalorder %s1493_s21, %s1848_s9 }
  0x17   :  { %p1499_p10 = pnand %p1497_p9, %p1494_p8 }
  0x19   :  { %1502 = shalt.err (!%p1499_p10)
}
  0x1a   :  { %s1503_s27 = scalar_lea.vmem %s55_s18, 16  ;;  %s1507_s0 = scalar_lea.vmem %s55_s18, 32 }
  0x1b   :  { %p1504_p11 = scmp.ne.s32.totalorder %s55_s18, %s1503_s27  ;;  %p1508_p12 = scmp.lt.s32.totalorder %s55_s18, %s55_s18 }
  0x1c   :  { %p1509_p13 = scmp.lt.s32.totalorder %s1507_s0, %s1503_s27 }
  0x1e   :  { %p1510_p0 = por %p1509_p13, %p1508_p12 }
  0x20   :  { %p1511_p1 = pnand %p1510_p0, %p1504_p11 }
  0x22   :  { %1514 = shalt.err (!%p1511_p1)
}
  0x23   :  { %57 = dma.hbm_to_vmem [thread:$0]  %s1848_s9, 16, %s55_s18, [#allocation7]  }
  0x24   :  { %1537 = dma.done.wait [#allocation4], 256  }
  0x25   :  { %1538 = vsyncadd [#allocation4], 4294967040 }
  0x26   :  { %1539 = dma.done.wait [#allocation7], 16  }
  0x27   :  { %1540 = vsyncadd [#allocation7], 4294967280  ;;  %vm72_vm0 = vcmask 261120   ;;  %v1648_v0 = vld [vmem:[#allocation3] sm:$0xff]  ;;  %v1650_v1 = vld [vmem:[#allocation3 + $0x8] sm:$0xff]  ;;  %v1547_v36 = vmov 0.0  }
  0x28   :  { %v73_v2 = vsel %vm72_vm0, %v1648_v0, 0.0  ;;  %v76_v3 = vsel %vm72_vm0, %v1650_v1, 0.0  ;;  %v116_v14 = vld [vmem:[%s1842_s3] sm:$0xff]  ;;  %v117_v15 = vld [vmem:[%s1842_s3 + $0x8] sm:$0xff]  ;;  %v118_v16 = vld [vmem:[%s1842_s3 + $0x10] sm:$0xff]  ;;  %1323 = vmatprep.subr.mxu0 %v1547_v36  ;;  %vm1548_vm1 = vmmov 0  }
  0x29   :  { %74 = vadd.xlane.f32.xlu0 %v73_v2  ;;  %v1394_v17 = vpack.c.bf16 %v117_v15, %v116_v14  ;;  %v119_v18 = vld [vmem:[%s1842_s3 + $0x18] sm:$0xff]  ;;  %v1231_v27 = vld [vmem:[%s1840_s1] ss:$0 sm:$0xff]  ;;  %1325 = vmatprep.mubr.msk.f32.mxu0 %vm1548_vm1, %v1547_v36  ;;  %s1549_s1 = smov 80   ;;  %s1551_s24 = smov 112   ;;  %vm204_vm2 = vcmask 130048  }
  0x2a   :  { %v1398_v19 = vpack.c.bf16 %v119_v18, %v118_v16  ;;  %v1232_v29 = vld [vmem:[%s1841_s2] ss:$0 sm:$0xff]  ;;  %s1550_s2 = smov 96   ;;  %vm280_vm3 = vcmask 64512   ;;  %s1552_s25 = smov 48   ;;  %vm539_vm4 = vcmask 261248  }
  0x2b   :  { %1395 = vmatprep.subr.bf16.mxu1 %v1394_v17  ;;  %s1553_s26 = smov 64   ;;  %s1554_s27 = smov 16   ;;  %vm1127_vm5 = vcmask 523264  }
  0x2c   :  { %1397 = vmatpush3.bf16.msra.mxu1 %v1394_v17 }
  0x2d   :  { %77 = vadd.xlane.f32.xlu0 %v76_v3  ;;  %1399 = vmatprep.subr.bf16.mxu1 %v1398_v19 }
  0x30   :  { %1401 = vmatpush3.bf16.msra.mxu1 %v1398_v19 }
  0x31   :  { %1313 = vmatprep.subr.mxu1 %v1547_v36 }
  0xb6   :  { %v75_v4 = vpop.xlane.xlu0 %74 }
  0xb7   :  { %v80_v5 = vmul.f32 0.03125, %v75_v4 }
  0xb9   :  { %v82_v6 = vsub.f32 %v1648_v0, %v80_v5 }
  0xba   :  { %v78_v7 = vpop.xlane.xlu0 %77 }
  0xbb   :  { %v81_v8 = vmul.f32 0.03125, %v78_v7  ;;  %v84_v9 = vmul.f32 %v82_v6, %v82_v6 }
  0xbd   :  { %v83_v10 = vsub.f32 %v1650_v1, %v81_v8  ;;  %v86_v11 = vsel %vm72_vm0, %v84_v9, 0.0 }
  0xbe   :  { %87 = vadd.xlane.f32.xlu1 %v86_v11 }
  0xbf   :  { %v85_v12 = vmul.f32 %v83_v10, %v83_v10 }
  0xc1   :  { %v89_v13 = vsel %vm72_vm0, %v85_v12, 0.0 }
  0xc2   :  { %90 = vadd.xlane.f32.xlu1 %v89_v13 }
 0x14b   :  { %v88_v20 = vpop.xlane.xlu1 %87 }
 0x14c   :  { %v92_v21 = vmul.f32 0.03125, %v88_v20 }
 0x14e   :  { %v94_v22 = vadd.f32 0.0001, %v92_v21 }
 0x14f   :  { %v91_v23 = vpop.xlane.xlu1 %90 }
 0x150   :  { %1447 = vrsqrt.f32 %v94_v22  ;;  %v93_v24 = vmul.f32 0.03125, %v91_v23 }
 0x152   :  { %v95_v25 = vadd.f32 0.0001, %v93_v24 }
 0x154   :  { %1449 = vrsqrt.f32 %v95_v25 }
 0x15a   :  { %v1448_v26 = vpop.eup %1447 }
 0x15b   :  { %v98_v28 = vmul.f32 %v1448_v26, %v82_v6 }
 0x15d   :  { %v106_v30 = vmul.f32 %v1231_v27, %v98_v28 }
 0x15e   :  { %v1450_v31 = vpop.eup %1449 }
 0x15f   :  { %v99_v32 = vmul.f32 %v1450_v31, %v83_v10  ;;  %v114_v33 = vadd.f32 %v1232_v29, %v106_v30 }
 0x161   :  { %v107_v34 = vmul.f32 %v1231_v27, %v99_v32  ;;  %1310 = vmatprep.mubr.msk.f32.mxu1 %vm72_vm0, %v114_v33 }
 0x163   :  { %v115_v35 = vadd.f32 %v1232_v29, %v107_v34 }
 0x165   :  { %1311 = vmatmul.mubr.msk.f32.vlgmr.msra.gmra.mrb[0].mxu1 %vm72_vm0, %v115_v35 }
 0x166   :  { %1315 = vmatprep.mubr.msk.f32.mxu1 %vm1548_vm1, %v1547_v36 }
 0x238   :  { %v1686_v37 = vpop.f32.mrb[0].mxu1 }
 0x239   :  { %v1688_v38 = vpop.f32.mrb[1].mxu1 }
 0x23a   :  { %371 = vrot.lane.b32.xlu1 %v1688_v38, %s1549_s1  ;;  %202 = vrot.lane.b32.xlu0 %v1688_v38, %s1550_s2 }
 0x23e   :  { %369 = vrot.lane.b32.xlu1 %v1688_v38, %s1551_s24  ;;  %709 = vrot.lane.b32.xlu0 %v1686_v37, %s1549_s1 }
 0x242   :  { %542 = vrot.lane.b32.xlu1 %v1686_v37, %s1550_s2 }
 0x246   :  { %707 = vrot.lane.b32.xlu1 %v1686_v37, %s1551_s24 }
 0x2ac   :  { %v372_v39 = vpop.permute.xlu1 %371  ;;  %v203_v40 = vpop.permute.xlu0 %202 }
 0x2ad   :  { %1314 = vmatpush3.xpose.msk.msra.mxu1 %vm204_vm2, %v203_v40  ;;  %1324 = vmatpush3.xpose.msk.msra.mxu0 %vm204_vm2, %v372_v39 }
 0x2ae   :  { %1333 = vmatprep.subr.mxu0 %v1547_v36  ;;  %1318 = vmatprep.subr.mxu1 %v1547_v36 }
 0x2b0   :  { %v370_v41 = vpop.permute.xlu1 %369  ;;  %1316 = vmatmul.mubr.msk.f32.vlgmr.msra.gmra.mrb[2].mxu1 %vm204_vm2, %v1688_v38  ;;  %v710_v43 = vpop.permute.xlu0 %709 }
 0x2b1   :  { %1326 = vmatmul.mubr.msk.f32.vlgmr.msra.gmra.mrb[0].mxu0 %vm204_vm2, %v370_v41  ;;  %1320 = vmatprep.mubr.msk.f32.mxu1 %vm1548_vm1, %v1547_v36  ;;  %v880_v41 = vld [vmem:[%s1843_s4] sm:$0xff] }
 0x2b2   :  { %1335 = vmatprep.mubr.msk.f32.mxu0 %vm1548_vm1, %v1547_v36 }
 0x2b4   :  { %v543_v42 = vpop.permute.xlu1 %542 }
 0x2b5   :  { %1334 = vmatpush3.xpose.msk.msra.mxu0 %vm204_vm2, %v543_v42  ;;  %v881_v42 = vld [vmem:[%s1843_s4 + $0x8] sm:$0xff] }
 0x2b6   :  { %1343 = vmatprep.subr.mxu0 %v1547_v36 }
 0x2b8   :  { %1336 = vmatmul.mubr.msk.f32.vlgmr.msra.gmra.mrb[2].mxu0 %vm204_vm2, %v1686_v37  ;;  %v708_v44 = vpop.permute.xlu1 %707 }
 0x2b9   :  { %1344 = vmatpush3.xpose.msk.msra.mxu0 %vm204_vm2, %v710_v43  ;;  %1345 = vmatprep.mubr.msk.f32.mxu0 %vm1548_vm1, %v1547_v36  ;;  %v1402_v43 = vpack.c.bf16 %v881_v42, %v880_v41  ;;  %v1252_v42 = vld [vmem:[#allocation6] ss:$0 sm:$0xff] }
 0x2bb   :  { %1403 = vmatprep.subr.bf16.mxu0 %v1402_v43 }
 0x2bc   :  { %1346 = vmatmul.mubr.msk.f32.vlgmr.msra.gmra.mrb[4].mxu0 %vm204_vm2, %v708_v44  ;;  %v882_v44 = vld [vmem:[%s1843_s4 + $0x10] sm:$0xff] }
 0x2bd   :  { %1405 = vmatpush3.bf16.msra.mxu0 %v1402_v43 }
 0x383   :  { %v275_v45 = vpop.f32.mrb[2].mxu1 }
 0x384   :  { %v279_v46 = vmul.f32 0.25, %v275_v45  ;;  %v1317_v47 = vpop.f32.mrb[3].mxu1  ;;  %v443_v48 = vpop.f32.mrb[0].mxu0  ;;  %v883_v45 = vld [vmem:[%s1843_s4 + $0x18] sm:$0xff] }
 0x385   :  { %v447_v49 = vmul.f32 0.25, %v443_v48  ;;  %v1327_v50 = vpop.f32.mrb[1].mxu0 }
 0x386   :  { %v281_v51 = vsel %vm280_vm3, %v279_v46, -inf }
 0x387   :  { %282 = vmax.xlane.f32.xlu0 %v281_v51  ;;  %v448_v52 = vsel %vm280_vm3, %v447_v49, -inf }
 0x388   :  { %449 = vmax.xlane.f32.xlu1 %v448_v52 }
 0x38b   :  { %v614_v53 = vpop.f32.mrb[2].mxu0 }
 0x38c   :  { %v618_v54 = vmul.f32 0.25, %v614_v53  ;;  %v1337_v55 = vpop.f32.mrb[3].mxu0  ;;  %v1247_v53 = vld [vmem:[%s1844_s5] ss:$0 sm:$0xff] }
 0x38e   :  { %v619_v56 = vsel %vm280_vm3, %v618_v54, -inf }
 0x38f   :  { %620 = vmax.xlane.f32.xlu0 %v619_v56  ;;  %v781_v57 = vpop.f32.mrb[4].mxu0 }
 0x390   :  { %v785_v58 = vmul.f32 0.25, %v781_v57  ;;  %v1347_v59 = vpop.f32.mrb[5].mxu0 }
 0x392   :  { %v786_v60 = vsel %vm280_vm3, %v785_v58, -inf }
 0x393   :  { %787 = vmax.xlane.f32.xlu0 %v786_v60 }
 0x414   :  { %v283_v61 = vpop.xlane.xlu0 %282 }
 0x415   :  { %v284_v62 = vsub.f32 %v279_v46, %v283_v61  ;;  %v450_v63 = vpop.xlane.xlu1 %449  ;;  %v1406_v46 = vpack.c.bf16 %v883_v45, %v882_v44 }
 0x416   :  { %v451_v2 = vsub.f32 %v447_v49, %v450_v63 }
 0x417   :  { %v285_v3 = vmul.f32 1.442695, %v284_v62  ;;  %1407 = vmatprep.subr.bf16.mxu0 %v1406_v46 }
 0x418   :  { %v452_v4 = vmul.f32 1.442695, %v451_v2  ;;  %1409 = vmatpush3.bf16.msra.mxu0 %v1406_v46 }
 0x419   :  { %1451 = vpow2.f32 %v285_v3 }
 0x41a   :  { %1453 = vpow2.f32 %v452_v4 }
 0x41c   :  { %v621_v5 = vpop.xlane.xlu0 %620 }
 0x41d   :  { %v622_v6 = vsub.f32 %v618_v54, %v621_v5 }
 0x41f   :  { %v623_v7 = vmul.f32 1.442695, %v622_v6 }
 0x420   :  { %v788_v14 = vpop.xlane.xlu0 %787 }
 0x421   :  { %1455 = vpow2.f32 %v623_v7  ;;  %v789_v15 = vsub.f32 %v785_v58, %v788_v14  ;;  %v1112_v14 = vld [vmem:[%s1849_s10] sm:$0xff] }
 0x423   :  { %v1452_v8 = vpop.eup %1451  ;;  %v790_v16 = vmul.f32 1.442695, %v789_v15  ;;  %v1113_v15 = vld [vmem:[%s1849_s10 + $0x8] sm:$0xff] }
 0x424   :  { %v1454_v9 = vpop.eup %1453  ;;  %v287_v10 = vsel %vm280_vm3, %v1452_v8, 0.0 }
 0x425   :  { %288 = vadd.xlane.f32.xlu0 %v287_v10  ;;  %v454_v11 = vsel %vm280_vm3, %v1454_v9, 0.0  ;;  %1457 = vpow2.f32 %v790_v16  ;;  %v1114_v16 = vld [vmem:[%s1849_s10 + $0x10] sm:$0xff] }
 0x426   :  { %455 = vadd.xlane.f32.xlu1 %v454_v11  ;;  %v1020_v11 = vld [vmem:[%s1847_s8 + $0x10] sm:$0xff] }
 0x42b   :  { %v1456_v12 = vpop.eup %1455 }
 0x42c   :  { %v625_v13 = vsel %vm280_vm3, %v1456_v12, 0.0 }
 0x42d   :  { %626 = vadd.xlane.f32.xlu0 %v625_v13 }
 0x42f   :  { %v1458_v17 = vpop.eup %1457 }
 0x430   :  { %v792_v18 = vsel %vm280_vm3, %v1458_v17, 0.0 }
 0x437   :  { %459 = vrot.lane.b32.xlu1 %v1688_v38, %s1552_s25 }
 0x43b   :  { %630 = vrot.lane.b32.xlu1 %v1686_v37, %s1553_s26 }
 0x443   :  { %292 = vrot.lane.b32.xlu0 %v1688_v38, %s1553_s26 }
 0x45f   :  { %793 = vadd.xlane.f32.xlu1 %v792_v18  ;;  %v1115_v18 = vld [vmem:[%s1849_s10 + $0x18] sm:$0xff] }
 0x470   :  { %797 = vrot.lane.b32.xlu1 %v1686_v37, %s1552_s25 }
 0x4b2   :  { %v289_v19 = vpop.xlane.xlu0 %288 }
 0x4b3   :  { %1459 = vrcp.f32 %v289_v19  ;;  %v456_v20 = vpop.xlane.xlu1 %455  ;;  %v1422_v19 = vpack.c.bf16 %v1115_v18, %v1114_v16 }
 0x4b4   :  { %1461 = vrcp.f32 %v456_v20  ;;  %v1116_v20 = vld [vmem:[%s1849_s10 + $0x20] sm:$0xff] }
 0x4b7   :  { %v460_v24 = vpop.permute.xlu1 %459 }
 0x4ba   :  { %v627_v21 = vpop.xlane.xlu0 %626 }
 0x4bb   :  { %1463 = vrcp.f32 %v627_v21  ;;  %v631_v28 = vpop.permute.xlu1 %630  ;;  %v1117_v21 = vld [vmem:[%s1849_s10 + $0x28] sm:$0xff] }
 0x4bd   :  { %v1460_v22 = vpop.eup %1459 }
 0x4be   :  { %v291_v23 = vmul.f32 %v1460_v22, %v1452_v8  ;;  %v293_v25 = vpop.permute.xlu0 %292  ;;  %v1462_v26 = vpop.eup %1461  ;;  %v1018_v8 = vld [vmem:[%s1847_s8] sm:$0xff]  ;;  %v1426_v22 = vpack.c.bf16 %v1117_v21, %v1116_v20 }
 0x4bf   :  { %1319 = vmatpush3.msra.mxu1 %v293_v25  ;;  %v458_v27 = vmul.f32 %v1462_v26, %v1454_v9  ;;  %v1019_v9 = vld [vmem:[%s1847_s8 + $0x8] sm:$0xff] }
 0x4c0   :  { %1321 = vmatmul.mubr.msk.f32.vlgmr.msra.gmra.mrb[4].mxu1 %vm280_vm3, %v291_v23  ;;  %1328 = vmatprep.subr.mxu1 %v1547_v36  ;;  %v1410_v10 = vpack.c.bf16 %v1019_v9, %v1018_v8 }
 0x4c1   :  { %1329 = vmatpush3.msra.mxu1 %v460_v24  ;;  %1330 = vmatprep.mubr.msk.f32.mxu1 %vm1548_vm1, %v1547_v36 }
 0x4c2   :  { %1338 = vmatprep.subr.mxu1 %v1547_v36 }
 0x4c4   :  { %1331 = vmatmul.mubr.msk.f32.vlgmr.msra.gmra.mrb[6].mxu1 %vm280_vm3, %v458_v27 }
 0x4c5   :  { %v1464_v29 = vpop.eup %1463  ;;  %1339 = vmatpush3.msra.mxu1 %v631_v28  ;;  %1340 = vmatprep.mubr.msk.f32.mxu1 %vm1548_vm1, %v1547_v36 }
 0x4c6   :  { %v629_v30 = vmul.f32 %v1464_v29, %v1456_v12  ;;  %1348 = vmatprep.subr.mxu1 %v1547_v36  ;;  %v1021_v12 = vld [vmem:[%s1847_s8 + $0x18] sm:$0xff] }
 0x4c7   :  { %v1414_v13 = vpack.c.bf16 %v1021_v12, %v1020_v11 }
 0x4c8   :  { %1341 = vmatmul.mubr.msk.f32.vlgmr.msra.gmra.mrb[8].mxu1 %vm280_vm3, %v629_v30  ;;  %v1250_v30 = vld [vmem:[%s1845_s6] ss:$0 sm:$0xff] }
 0x4c9   :  { %1350 = vmatprep.mubr.msk.f32.mxu1 %vm1548_vm1, %v1547_v36 }
 0x4ec   :  { %v794_v31 = vpop.xlane.xlu1 %793 }
 0x4ed   :  { %1465 = vrcp.f32 %v794_v31 }
 0x4f0   :  { %v798_v32 = vpop.permute.xlu1 %797 }
 0x4f1   :  { %1349 = vmatpush3.msra.mxu1 %v798_v32  ;;  %v1251_v32 = vld [vmem:[%s1846_s7] ss:$0 sm:$0xff] }
 0x4f2   :  { %1411 = vmatprep.subr.bf16.mxu1 %v1410_v10 }
 0x4f7   :  { %v1466_v33 = vpop.eup %1465 }
 0x4f8   :  { %v796_v34 = vmul.f32 %v1466_v33, %v1458_v17  ;;  %v1418_v17 = vpack.c.bf16 %v1113_v15, %v1112_v14 }
 0x4fa   :  { %1351 = vmatmul.mubr.msk.f32.vlgmr.msra.gmra.mrb[10].mxu1 %vm280_vm3, %v796_v34  ;;  %1419 = vmatprep.subr.bf16.mxu0 %v1418_v17 }
 0x4fb   :  { %1413 = vmatpush3.bf16.msra.mxu1 %v1410_v10 }
 0x4fc   :  { %1415 = vmatprep.subr.bf16.mxu1 %v1414_v13 }
 0x4ff   :  { %1417 = vmatpush3.bf16.msra.mxu1 %v1414_v13 }
 0x593   :  { %v364_v35 = vpop.f32.mrb[4].mxu1 }
 0x594   :  { %368 = vst.msk [vmem:[#allocation2] sm:$0xff] %vm204_vm2, %v364_v35  ;;  %v1322_v37 = vpop.f32.mrb[5].mxu1 }
 0x597   :  { %v531_v38 = vpop.f32.mrb[6].mxu1 }
 0x598   :  { %536 = vrot.lane.b32.xlu0 %v531_v38, %s1554_s27  ;;  %v1332_v39 = vpop.f32.mrb[7].mxu1 }
 0x59b   :  { %v702_v40 = vpop.f32.mrb[8].mxu1 }
 0x59c   :  { %706 = vst.msk [vmem:[#allocation2 + $0x8] sm:$0xff] %vm204_vm2, %v702_v40  ;;  %v1342_v36 = vpop.f32.mrb[9].mxu1  ;;  %v1118_v40 = vld [vmem:[%s1849_s10 + $0x30] sm:$0xff] }
 0x59d   :  { %v1119_v36 = vld [vmem:[%s1849_s10 + $0x38] sm:$0xff]  ;;  %s1555_s10 = smov [#allocation8]  }
 0x59e   :  { %v1430_v41 = vpack.c.bf16 %v1119_v36, %v1118_v40  ;;  %s1218_s21 = sshll.u32 %s1555_s10, 4  ;;  %s1219_s21 = int_to_ptr.vmem [resolvable:$true] %s1218_s21 }
 0x59f   :  { %s1515_s3 = scalar_lea.vmem %s1219_s21, 256  ;;  %p1520_p3 = scmp.lt.s32.totalorder %s1219_s21, %s1219_s21 }
 0x5a0   :  { %p1516_p2 = scmp.ne.s32.totalorder %s1219_s21, %s1515_s3  ;;  %p1521_p4 = scmp.lt.s32.totalorder %s1515_s3, %s1515_s3 }
 0x5a2   :  { %p1522_p5 = por %p1521_p4, %p1520_p3 }
 0x5a4   :  { %p1523_p6 = pnand %p1522_p5, %p1516_p2 }
 0x5cd   :  { %v869_v47 = vpop.f32.mrb[10].mxu1 }
 0x5ce   :  { %874 = vrot.lane.b32.xlu1 %v869_v47, %s1554_s27  ;;  %v1352_v48 = vpop.f32.mrb[11].mxu1 }
 0x60a   :  { %v537_v49 = vpop.permute.xlu0 %536 }
 0x60b   :  { %540 = vst.msk [vmem:[#allocation2] sm:$0xff] %vm539_vm4, %v537_v49  ;;  %v1255_v49 = vld [vmem:[%s1850_s11] ss:$0 sm:$0xff] }
 0x612   :  { %v878_v50 = vld [vmem:[#allocation2] sm:$0xff] }
 0x613   :  { %1361 = vmatprep.mubr.msk.f32.mxu0 %vm72_vm0, %v878_v50 }
 0x640   :  { %v875_v51 = vpop.permute.xlu1 %874 }
 0x641   :  { %877 = vst.msk [vmem:[#allocation2 + $0x8] sm:$0xff] %vm539_vm4, %v875_v51 }
 0x648   :  { %v879_v52 = vld [vmem:[#allocation2 + $0x8] sm:$0xff] }
 0x649   :  { %1362 = vmatmul.mubr.msk.f32.vlgmr.msra.gmra.mrb[6].mxu0 %vm72_vm0, %v879_v52 }
 0x64a   :  { %1421 = vmatpush3.bf16.msra.mxu0 %v1418_v17 }
 0x64b   :  { %1423 = vmatprep.subr.bf16.mxu0 %v1422_v19 }
 0x64e   :  { %1425 = vmatpush3.bf16.msra.mxu0 %v1422_v19 }
 0x64f   :  { %1427 = vmatprep.subr.bf16.mxu0 %v1426_v22 }
 0x652   :  { %1429 = vmatpush3.bf16.msra.mxu0 %v1426_v22 }
 0x653   :  { %1431 = vmatprep.subr.bf16.mxu0 %v1430_v41 }
 0x656   :  { %1433 = vmatpush3.bf16.msra.mxu0 %v1430_v41 }
 0x71c   :  { %v1363_v54 = vpop.f32.mrb[6].mxu0 }
 0x71d   :  { %v969_v55 = vadd.f32 %v1363_v54, %v1247_v53  ;;  %v963_v56 = vpop.f32.mrb[7].mxu0 }
 0x71e   :  { %v964_v57 = vadd.f32 %v1247_v53, %v963_v56 }
 0x71f   :  { %v1760_v58 = vadd.f32 %v969_v55, %v1650_v1 }
 0x720   :  { %v1763_v59 = vadd.f32 %v964_v57, %v1648_v0 }
 0x721   :  { %v979_v60 = vsel %vm72_vm0, %v1760_v58, 0.0 }
 0x722   :  { %980 = vadd.xlane.f32.xlu1 %v979_v60  ;;  %v976_v61 = vsel %vm72_vm0, %v1763_v59, 0.0 }
 0x723   :  { %977 = vadd.xlane.f32.xlu0 %v976_v61 }
 0x7af   :  { %v981_v62 = vpop.xlane.xlu1 %980 }
 0x7b0   :  { %v983_v63 = vmul.f32 0.03125, %v981_v62  ;;  %v978_v2 = vpop.xlane.xlu0 %977 }
 0x7b1   :  { %v982_v3 = vmul.f32 0.03125, %v978_v2 }
 0x7b2   :  { %v985_v4 = vsub.f32 %v1760_v58, %v983_v63 }
 0x7b3   :  { %v984_v1 = vsub.f32 %v1763_v59, %v982_v3 }
 0x7b4   :  { %v987_v6 = vmul.f32 %v985_v4, %v985_v4 }
 0x7b5   :  { %v986_v5 = vmul.f32 %v984_v1, %v984_v1 }
 0x7b6   :  { %v991_v7 = vsel %vm72_vm0, %v987_v6, 0.0 }
 0x7b7   :  { %v988_v0 = vsel %vm72_vm0, %v986_v5, 0.0 }
 0x7b8   :  { %989 = vadd.xlane.f32.xlu0 %v988_v0 }
 0x7bc   :  { %992 = vadd.xlane.f32.xlu0 %v991_v7 }
 0x845   :  { %v990_v23 = vpop.xlane.xlu0 %989 }
 0x846   :  { %v994_v24 = vmul.f32 0.03125, %v990_v23 }
 0x848   :  { %v996_v25 = vadd.f32 0.0001, %v994_v24 }
 0x849   :  { %v993_v26 = vpop.xlane.xlu0 %992 }
 0x84a   :  { %1467 = vrsqrt.f32 %v996_v25  ;;  %v995_v27 = vmul.f32 0.03125, %v993_v26 }
 0x84c   :  { %v997_v28 = vadd.f32 0.0001, %v995_v27 }
 0x84e   :  { %1469 = vrsqrt.f32 %v997_v28 }
 0x854   :  { %v1468_v29 = vpop.eup %1467 }
 0x855   :  { %v1000_v31 = vmul.f32 %v1468_v29, %v984_v1 }
 0x857   :  { %v1008_v33 = vmul.f32 %v1250_v30, %v1000_v31 }
 0x858   :  { %v1470_v34 = vpop.eup %1469 }
 0x859   :  { %v1001_v35 = vmul.f32 %v1470_v34, %v985_v4  ;;  %v1016_v37 = vadd.f32 %v1251_v32, %v1008_v33 }
 0x85b   :  { %v1009_v38 = vmul.f32 %v1250_v30, %v1001_v35  ;;  %1372 = vmatprep.mubr.msk.f32.mxu1 %vm72_vm0, %v1016_v37 }
 0x85d   :  { %v1017_v39 = vadd.f32 %v1251_v32, %v1009_v38 }
 0x85f   :  { %1373 = vmatmul.mubr.msk.f32.vlgmr.msra.gmra.mrb[12].mxu1 %vm72_vm0, %v1017_v39 }
 0x932   :  { %v1374_v43 = vpop.f32.mrb[12].mxu1 }
 0x933   :  { %v1107_v44 = vadd.f32 %v1374_v43, %v1252_v42  ;;  %v1101_v45 = vpop.f32.mrb[13].mxu1 }
 0x934   :  { %v1102_v46 = vadd.f32 %v1252_v42, %v1101_v45 }
 0x935   :  { %v1111_v48 = vmax.f32 %v1107_v44, 0.0 }
 0x936   :  { %v1110_v47 = vmax.f32 %v1102_v46, 0.0 }
 0x938   :  { %1391 = vmatprep.mubr.msk.f32.mxu0 %vm1127_vm5, %v1110_v47 }
 0x939   :  { %1392 = vmatmul.mubr.msk.f32.vlgmr.msra.gmra.mrb[8].mxu0 %vm1127_vm5, %v1111_v48 }
 0xa0c   :  { %v1393_v50 = vpop.f32.mrb[8].mxu0 }
 0xa0d   :  { %v1206_v51 = vadd.f32 %v1393_v50, %v1255_v49  ;;  %v1200_v52 = vpop.f32.mrb[9].mxu0 }
 0xa0e   :  { %v1201_v53 = vadd.f32 %v1255_v49, %v1200_v52 }
 0xa0f   :  { %v1210_v54 = vadd.f32 %v1206_v51, %v1760_v58 }
 0xa10   :  { %v1209_v55 = vadd.f32 %v1201_v53, %v1763_v59 }
 0xa11   :  { %1212 = vst.msk [vmem:[#allocation8 + $0x8] sm:$0xff] %vm72_vm0, %v1210_v54 }
 0xa12   :  { %1211 = vst.msk [vmem:[#allocation8] sm:$0xff] %vm72_vm0, %v1209_v55 }
 0xa13   :  { %1526 = shalt.err (!%p1523_p6)
}
 0xa14   :  { %s1527_s1 = scalar_lea.hbm %s1851_s12, 256 }
 0xa15   :  { %p1528_p7 = scmp.ne.s32.totalorder %s1851_s12, %s1527_s1  ;;  %p1531_p8 = scmp.lt.u32.totalorder %s1527_s1, %s1851_s12 }
 0xa17   :  { %p1533_p9 = pnand %p1531_p8, %p1528_p7 }
 0xa19   :  { %1536 = shalt.err (!%p1533_p9)
}
 0xa1a   :  { %1224 = dma.vmem_to_hbm [thread:$0]  %s1219_s21, 256, %s1851_s12, [#allocation5], %s1544_s13, %s1544_s13, %s1545_s14  }
 0xa1b   :  { %1541 = dma.done.wait [#allocation5], 256  }
 0xa1c   :  { %1542 = vsyncadd [#allocation5], 4294967040 }
 0xa1d   :  { %1228 = vsyncpa [#allocation4], 1 }
 0xa1e   :  { %1229 = vsyncpa [#allocation7], 1 }
 0xa1f   :  { %1230 = vsyncpa [#allocation5], 1 }

</bundles_post_ra>
